<compile_context>
chip_gen: v7x
topology: tpu7x:2x2x1
jax: 0.10.0
libtpu: 0.0.40
codegen_flags: <defaults>
</compile_context>

<pallas_src>
import jax
import jax.numpy as jnp
from jax import lax
from jax.experimental import pallas as pl
from jax.experimental.pallas import tpu as pltpu


def _linear_kernel(x_ref, w_ref, b_ref, o_ref):
    # x_ref: (tile_b, F)   input rows (batch tile)
    # w_ref: (C, F)        native PyTorch weight layout
    # b_ref: (C, 1)        bias, broadcast across lanes
    # o_ref: (C, tile_b)   lane-dense (batch on lanes) output tile
    acc = lax.dot_general(
        w_ref[...],
        x_ref[...],
        dimension_numbers=(((1,), (1,)), ((), ())),  # contract F on the MXU
        preferred_element_type=jnp.float32,
    )
    o_ref[...] = (acc + b_ref[...]).astype(o_ref.dtype)


def _round_up(v, m):
    return ((v + m - 1) // m) * m


def _pick_tile_b(batch, tile_b_max):
    """Largest lane-aligned tile <= tile_b_max that minimizes padding waste."""
    tile_b_max = max(128, (tile_b_max // 128) * 128)
    n_tiles = -(-batch // tile_b_max)            # ceil
    tile_b = -(-batch // n_tiles)                # ceil -> balanced tiles
    return min(_round_up(tile_b, 128), tile_b_max)


def _forward_single_block(x, weight, bias_c1):
    """Whole problem in one VMEM-resident call: no grid, no pipeline."""
    B, _ = x.shape
    C = weight.shape[0]
    vmem = pl.BlockSpec(memory_space=pltpu.MemorySpace.VMEM)
    return pl.pallas_call(
        _linear_kernel,
        out_shape=jax.ShapeDtypeStruct((C, B), x.dtype),
        in_specs=[vmem, vmem, vmem],
        out_specs=pl.BlockSpec(memory_space=pltpu.MemorySpace.VMEM),
    )(x, weight, bias_c1)


def _forward_batch_tiled(x, weight, bias_c1, tile_b):
    """Batch-tiled path for large B: HBM<->VMEM pipelining with fat tiles."""
    B, F = x.shape
    C = weight.shape[0]
    pad = (-B) % tile_b
    if pad:
        x = jnp.pad(x, ((0, pad), (0, 0)))
    Bp = B + pad

    cost = pl.CostEstimate(
        flops=2 * Bp * F * C,
        transcendentals=0,
        bytes_accessed=Bp * F * 4 + C * F * 4 + C * 4 + Bp * C * 4,
    )

    out_cb = pl.pallas_call(
        _linear_kernel,
        out_shape=jax.ShapeDtypeStruct((C, Bp), x.dtype),
        grid=(Bp // tile_b,),
        in_specs=[
            pl.BlockSpec((tile_b, F), lambda i: (i, 0)),  # x: tiled over batch
            pl.BlockSpec((C, F), lambda i: (0, 0)),       # weight: resident
            pl.BlockSpec((C, 1), lambda i: (0, 0)),       # bias: resident
        ],
        out_specs=pl.BlockSpec((C, tile_b), lambda i: (0, i)),  # lane-dense
        compiler_params=pltpu.CompilerParams(
            dimension_semantics=(pltpu.PARALLEL,),
        ),
        cost_estimate=cost,
    )(x, weight, bias_c1)

    return out_cb[:, :B] if pad else out_cb


def simple_model_forward(x, weight, bias, *, tile_b_max=8192):
    """Equivalent of SimpleModel.forward: nn.Linear(10, num_classes).

    x:      (B, 10)            float32
    weight: (num_classes, 10)  float32  (native PyTorch layout, NOT transposed)
    bias:   (num_classes,)     float32
    returns (B, num_classes)   float32
    """
    B, _ = x.shape
    C = weight.shape[0]
    bias_c1 = bias.reshape(C, 1)  # (C, 1): broadcasts across lanes in-kernel

    if B > tile_b_max:
        tile_b = _pick_tile_b(B, tile_b_max)
        out_cb = _forward_batch_tiled(x, weight, bias_c1, tile_b)
    else:
        out_cb = _forward_single_block(x, weight, bias_c1)

    # Tiny (C, B) -> (B, C) to match the module's output layout.
    return out_cb.T


if __name__ == "__main__":
    key = jax.random.PRNGKey(0)
    k_x, k_w, k_b, k_x2, k_x3 = jax.random.split(key, 5)

    B, F, C = 8, 10, 2  # batch=8, in_features=10, num_classes=2

    x = jax.random.normal(k_x, (B, F), dtype=jnp.float32)
    # Deterministic "Kaiming-uniform-ish" init, synthetic (not a checkpoint).
    bound = 1.0 / jnp.sqrt(F)
    weight = jax.random.uniform(k_w, (C, F), minval=-bound, maxval=bound,
                                dtype=jnp.float32)
    bias = jax.random.uniform(k_b, (C,), minval=-bound, maxval=bound,
                              dtype=jnp.float32)

    # Small-batch (no-grid) path.
    out = jax.block_until_ready(simple_model_forward(x, weight, bias))
    ref = x @ weight.T + bias
    assert out.shape == (B, C)
    assert jnp.allclose(out, ref, atol=1e-5, rtol=1e-5), "mismatch vs reference"

    # Batch-tiled path, exact tile multiple (small tile just to exercise grid).
    B2 = 1024
    x2 = jax.random.normal(k_x2, (B2, F), dtype=jnp.float32)
    out2 = jax.block_until_ready(
        simple_model_forward(x2, weight, bias, tile_b_max=256))
    ref2 = x2 @ weight.T + bias
    assert out2.shape == (B2, C)
    assert jnp.allclose(out2, ref2, atol=1e-5, rtol=1e-5), "tiled path mismatch"

    # Ragged batch: adaptive tile + padding sliced off before return.
    B3 = 777
    x3 = jax.random.normal(k_x3, (B3, F), dtype=jnp.float32)
    out3 = jax.block_until_ready(
        simple_model_forward(x3, weight, bias, tile_b_max=256))
    ref3 = x3 @ weight.T + bias
    assert out3.shape == (B3, C)
    assert jnp.allclose(out3, ref3, atol=1e-5, rtol=1e-5), "ragged path mismatch"

    print("KERNEL_OK")
</pallas_src>

<mosaic_0001>
module attributes {stable_mosaic.version = 11 : i64} {
  func.func @_linear_kernel(%arg0: memref<8x10xf32, #tpu.memory_space<vmem>>, %arg1: memref<2x10xf32, #tpu.memory_space<vmem>>, %arg2: memref<2x1xf32, #tpu.memory_space<vmem>>, %arg3: memref<2x8xf32, #tpu.memory_space<vmem>>) attributes {dimension_semantics = [], scalar_prefetch = 0 : i64, scratch_operands = 0 : i64, tpu.core_type = #tpu.core_type<tc>} {
    %c0 = arith.constant 0 : index
    %c0_0 = arith.constant 0 : index
    %0 = vector.load %arg1[%c0, %c0_0] : memref<2x10xf32, #tpu.memory_space<vmem>>, vector<2x10xf32>
    %c0_1 = arith.constant 0 : index
    %c0_2 = arith.constant 0 : index
    %1 = vector.load %arg0[%c0_1, %c0_2] : memref<8x10xf32, #tpu.memory_space<vmem>>, vector<8x10xf32>
    %cst = arith.constant dense<0.000000e+00> : vector<2x8xf32>
    %2 = tpu.matmul %0, %1, %cst {dimension_numbers = #tpu.dot_dimension_numbers<[1], [1], [0], [0], [0, 0, 1, 0], [], []>} : vector<2x10xf32>, vector<8x10xf32>, vector<2x8xf32> -> vector<2x8xf32>
    %c0_3 = arith.constant 0 : index
    %c0_4 = arith.constant 0 : index
    %3 = vector.load %arg2[%c0_3, %c0_4] : memref<2x1xf32, #tpu.memory_space<vmem>>, vector<2x1xf32>
    %4 = vector.broadcast %3 : vector<2x1xf32> to vector<2x8xf32>
    %5 = arith.addf %2, %4 : vector<2x8xf32>
    %c0_5 = arith.constant 0 : index
    %c0_6 = arith.constant 0 : index
    %6 = vector.load %arg3[%c0_5, %c0_6] : memref<2x8xf32, #tpu.memory_space<vmem>>, vector<2x8xf32>
    tpu.vector_store %arg3[%c0_5, %c0_6], %5 {strides = array<i32>} : memref<2x8xf32, #tpu.memory_space<vmem>>, vector<2x8xf32>,
    return
  }
}

</mosaic_0001>

<bundles_post_ra>
// kernel: tpu_custom_call.1
= control target key start
LH: loop header
LB: loop body
LE: loop exit
PB: predicated region body
PF: predicated region fallthrough
CT: control target
= control target key end

     0   :  { %8 = vsyncpa [#allocation3], 0  ;;  %s247_s0 = inlined_call_operand.hbm [shape: f32[8,10], index: 0, kind: input, shape index: {}]   ;;  %s248_s1 = inlined_call_operand.vmem [shape: f32[2,10], index: 1, kind: input, shape index: {}]   ;;  %s249_s2 = inlined_call_operand.vmem [shape: f32[2,1], index: 2, kind: input, shape index: {}]   ;;  %s250_s3 = inlined_call_operand.hbm [shape: f32[2,8], index: 3, kind: output, shape index: {}]  }
   0x1   :  { %9 = vsyncpa [#allocation4], 0  ;;  %s192_s12 = smov [#allocation2]   ;;  %s144_s16 = scalar_lea.hbm %s247_s0, 128 }
   0x2   :  { %s16_s13 = sshll.u32 %s192_s12, 4  ;;  %p145_p0 = scmp.ne.s32.totalorder %s247_s0, %s144_s16  ;;  %s17_s13 = int_to_ptr.vmem [resolvable:$true] %s16_s13 }
   0x3   :  { %p148_p1 = scmp.lt.u32.totalorder %s144_s16, %s247_s0 }
   0x5   :  { %p150_p2 = pnand %p148_p1, %p145_p0 }
   0x7   :  { %153 = shalt.err (!%p150_p2)
}
   0x8   :  { %s154_s21 = scalar_lea.vmem %s17_s13, 128  ;;  %p159_p4 = scmp.lt.s32.totalorder %s17_s13, %s17_s13 }
   0x9   :  { %p155_p3 = scmp.ne.s32.totalorder %s17_s13, %s154_s21  ;;  %p160_p5 = scmp.lt.s32.totalorder %s154_s21, %s154_s21 }
   0xb   :  { %p161_p6 = por %p160_p5, %p159_p4 }
   0xd   :  { %p162_p7 = pnand %p161_p6, %p155_p3 }
   0xf   :  { %165 = shalt.err (!%p162_p7)
}
  0x10   :  { %19 = dma.hbm_to_vmem [thread:$0]  %s247_s0, 128, %s17_s13, [#allocation3]  }
  0x11   :  { %188 = dma.done.wait [#allocation3], 128  }
  0x12   :  { %189 = vsyncadd [#allocation3], 4294967168  ;;  %v193_v0 = vmov 0.0   ;;  %vm194_vm0 = vmmov 0   ;;  %v195_v1 = vmov 0   ;;  %vm35_vm1 = vcmask 80896  }
  0x13   :  { %133 = vmatprep.subr.mxu0 %v193_v0  ;;  %135 = vmatprep.mubr.msk.f32.mxu0 %vm194_vm0, %v193_v0  ;;  %v28_v2 = vld [vmem:[#allocation2] sm:$0xff]  ;;  %s196_s0 = smov [#allocation5]   ;;  %vm112_vm2 = vcmask 58368  }
  0x14   :  { %143 = vset.pattern.permute.xlu0 %v195_v1  ;;  %v29_v3 = vld [vmem:[%s249_s2] sm:$0x3]  ;;  %134 = vmatpush3.xpose.msk.msra.mxu0 %vm35_vm1, %v28_v2  ;;  %s120_s28 = sshll.u32 %s196_s0, 4  ;;  %s121_s28 = int_to_ptr.vmem [resolvable:$true] %s120_s28 }
  0x15   :  { %v27_v4 = vld [vmem:[%s248_s1] sm:$0x3]  ;;  %32 = vperm.xlu0 %143, %v29_v3   ;;  %s166_s29 = scalar_lea.vmem %s121_s28, 32  ;;  %p171_p9 = scmp.lt.s32.totalorder %s121_s28, %s121_s28 }
  0x16   :  { %p167_p8 = scmp.ne.s32.totalorder %s121_s28, %s166_s29  ;;  %p172_p10 = scmp.lt.s32.totalorder %s166_s29, %s166_s29 }
  0x17   :  { %136 = vmatmul.mubr.msk.f32.vlgmr.msra.gmra.mrb[0].mxu0 %vm35_vm1, %v27_v4 }
  0x18   :  { %p173_p11 = por %p172_p10, %p171_p9 }
  0x1a   :  { %p174_p12 = pnand %p173_p11, %p167_p8 }
  0x94   :  { %v33_v5 = vpop.permute.xlu0 %32 }
  0xea   :  { %v108_v6 = vpop.f32.mrb[0].mxu0 }
  0xeb   :  { %v109_v7 = vadd.f32 %v108_v6, %v33_v5  ;;  %v137_v8 = vpop.f32.mrb[1].mxu0 }
  0xed   :  { %113 = vst.msk [vmem:[#allocation5] sm:$0x3] %vm112_vm2, %v109_v7 }
  0xee   :  { %177 = shalt.err (!%p174_p12)
}
  0xef   :  { %s178_s30 = scalar_lea.hbm %s250_s3, 32 }
  0xf0   :  { %p179_p13 = scmp.ne.s32.totalorder %s250_s3, %s178_s30  ;;  %p182_p0 = scmp.lt.u32.totalorder %s178_s30, %s250_s3 }
  0xf2   :  { %p184_p1 = pnand %p182_p0, %p179_p13 }
  0xf4   :  { %187 = shalt.err (!%p184_p1)
}
  0xf5   :  { %123 = dma.vmem_to_hbm [thread:$0]  %s121_s28, 32, %s250_s3, [#allocation4]  }
  0xf6   :  { %190 = dma.done.wait [#allocation4], 32  }
  0xf7   :  { %191 = vsyncadd [#allocation4], 4294967264 }
  0xf8   :  { %127 = vsyncpa [#allocation3], 1 }
  0xf9   :  { %128 = vsyncpa [#allocation4], 1 }

</bundles_post_ra>
